<compile_context>
chip_gen: v6e
topology: v6e:2x2x1
jax: 0.10.0
libtpu: 0.0.40
codegen_flags: <defaults>
</compile_context>

<pallas_src>
import functools

import jax
import jax.numpy as jnp
from jax.experimental import pallas as pl
from jax.experimental.pallas import tpu as pltpu

_EPS = 1e-5


def _make_kernel(hw_actual, hw_padded):
    inv_hw = 1.0 / float(hw_actual)
    need_mask = hw_padded != hw_actual

    def kernel(x_ref, gamma_ref, beta_ref, o_ref):
        # x_ref:     (R, HW_pad)  rows = flattened (n, c) pairs
        # gamma_ref: (R, 1)
        # beta_ref:  (R, 1)
        x = x_ref[...].astype(jnp.float32)                        # (R, HW_pad)

        if need_mask:
            lane = jax.lax.broadcasted_iota(jnp.int32, x.shape, dimension=1)
            valid = lane < hw_actual
            xv = jnp.where(valid, x, 0.0)
        else:
            xv = x

        # Biased mean / variance over the true HW elements (two-pass, f32).
        mean = jnp.sum(xv, axis=-1, keepdims=True) * inv_hw       # (R, 1)
        d = xv - mean
        if need_mask:
            d = jnp.where(valid, d, 0.0)
        var = jnp.sum(d * d, axis=-1, keepdims=True) * inv_hw     # (R, 1)

        gamma = gamma_ref[...].astype(jnp.float32)                # (R, 1)
        beta = beta_ref[...].astype(jnp.float32)                  # (R, 1)

        scale = gamma * jax.lax.rsqrt(var + _EPS)                 # (R, 1)
        shift = beta - mean * scale                               # (R, 1)

        o_ref[...] = (x * scale + shift).astype(o_ref.dtype)

    return kernel


def conditional_instance_norm_2d(x, y, embed_weight, num_features, bias=True):
    """x: (N, C, H, W) NCHW; y: (N,) int class ids; embed_weight: (num_classes, 2C or C)."""
    N, C, H, W = x.shape
    assert C == num_features
    HW = H * W
    NC = N * C

    # Glue: embedding lookup + chunk (plain JAX gather; not the hot path).
    emb = embed_weight[y]                                         # (N, 2C) or (N, C)
    if bias:
        gamma = emb[:, :num_features]                             # (N, C)
        beta = emb[:, num_features:]                              # (N, C)
    else:
        gamma = emb
        # TODO(synk): bias=False still streams an all-zero beta; could skip it.
        beta = jnp.zeros_like(gamma)

    gamma = gamma.reshape(NC, 1)
    beta = beta.reshape(NC, 1)

    # Lane-dense padding of the reduction axis (unmasked vst on the output).
    HW_pad = ((HW + 127) // 128) * 128
    x_flat = x.reshape(NC, HW)
    if HW_pad != HW:
        x_flat = jnp.pad(x_flat, ((0, 0), (0, HW_pad - HW)))

    # Row-tile sizing: in + out, double-buffered, must fit a conservative VMEM
    # budget (safe for v7x's 64 MiB VMEM; well above default scoped limits once
    # vmem_limit_bytes is raised below).
    itemsize = jnp.dtype(x.dtype).itemsize
    VMEM_BUDGET = 32 * 1024 * 1024                                # working-set target
    max_rows = VMEM_BUDGET // (4 * HW_pad * itemsize)             # 2 bufs in + 2 out
    max_rows = max(8, (max_rows // 8) * 8)                        # multiple of 8 sublanes
    rows_tile = min(max_rows, ((NC + 7) // 8) * 8)

    # Pad the row count so it divides evenly into tiles (padded rows are zeros;
    # they produce finite garbage that gets sliced away).
    NC_pad = ((NC + rows_tile - 1) // rows_tile) * rows_tile
    if NC_pad != NC:
        pad_r = NC_pad - NC
        x_flat = jnp.pad(x_flat, ((0, pad_r), (0, 0)))
        gamma = jnp.pad(gamma, ((0, pad_r), (0, 0)))
        beta = jnp.pad(beta, ((0, pad_r), (0, 0)))

    grid = (NC_pad // rows_tile,)
    kernel = _make_kernel(HW, HW_pad)

    out = pl.pallas_call(
        kernel,
        out_shape=jax.ShapeDtypeStruct((NC_pad, HW_pad), x.dtype),
        grid_spec=pltpu.PrefetchScalarGridSpec(
            num_scalar_prefetch=0,
            grid=grid,
            in_specs=[
                pl.BlockSpec((rows_tile, HW_pad), lambda r: (r, 0)),
                pl.BlockSpec((rows_tile, 1), lambda r: (r, 0)),
                pl.BlockSpec((rows_tile, 1), lambda r: (r, 0)),
            ],
            out_specs=pl.BlockSpec((rows_tile, HW_pad), lambda r: (r, 0)),
        ),
        compiler_params=pltpu.CompilerParams(
            dimension_semantics=("parallel",),
            vmem_limit_bytes=64 * 1024 * 1024,
        ),
    )(x_flat, gamma, beta)

    out = out[:NC, :HW].reshape(N, C, H, W)
    return out


def _reference(x, y, embed_weight, num_features, bias=True):
    # Pure-JAX reference mirroring the PyTorch module.
    mean = jnp.mean(x, axis=(2, 3), keepdims=True)
    var = jnp.var(x, axis=(2, 3), keepdims=True)                  # biased
    h = (x - mean) / jnp.sqrt(var + _EPS)
    emb = embed_weight[y]
    if bias:
        gamma = emb[:, :num_features]
        beta = emb[:, num_features:]
        return gamma[:, :, None, None] * h + beta[:, :, None, None]
    else:
        gamma = emb
        return gamma[:, :, None, None] * h


if __name__ == "__main__":
    num_features = 4
    num_classes = 10
    N, C, H, W = 2, num_features, 16, 16

    key = jax.random.PRNGKey(0)
    kx, ky, kw = jax.random.split(key, 3)

    x = jax.random.normal(kx, (N, C, H, W), dtype=jnp.float32)
    y = jax.random.randint(ky, (N,), 0, num_classes, dtype=jnp.int32)

    # Deterministic parameter init matching the PyTorch module's __init__ (bias=True):
    #   embed.weight[:, :C] ~ uniform(0, 1), embed.weight[:, C:] = 0
    embed_weight = jnp.concatenate(
        [jax.random.uniform(kw, (num_classes, num_features), dtype=jnp.float32),
         jnp.zeros((num_classes, num_features), dtype=jnp.float32)],
        axis=-1)

    out = conditional_instance_norm_2d(x, y, embed_weight, num_features, bias=True)
    out = jax.block_until_ready(out)

    ref = _reference(x, y, embed_weight, num_features, bias=True)
    assert out.shape == (N, C, H, W)
    assert jnp.allclose(out, ref, atol=1e-5, rtol=1e-5), "mismatch vs reference"

    print("KERNEL_OK")
</pallas_src>

<mosaic_0001>
module attributes {stable_mosaic.version = 11 : i64} {
  func.func @kernel(%arg0: i32, %arg1: memref<8x256xf32, #tpu.memory_space<vmem>>, %arg2: memref<8x1xf32, #tpu.memory_space<vmem>>, %arg3: memref<8x1xf32, #tpu.memory_space<vmem>>, %arg4: memref<8x256xf32, #tpu.memory_space<vmem>>) attributes {dimension_semantics = [#tpu.dimension_semantics<parallel>], iteration_bounds = array<i64: 1>, scalar_prefetch = 0 : i64, scratch_operands = 0 : i64, tpu.core_type = #tpu.core_type<tc>, window_params = [{transform_indices = @transform_0, window_bounds = array<i64: 8, 256>}, {transform_indices = @transform_1, window_bounds = array<i64: 8, 1>}, {transform_indices = @transform_2, window_bounds = array<i64: 8, 1>}, {transform_indices = @transform_3, window_bounds = array<i64: 8, 256>}]} {
    %c0 = arith.constant 0 : index
    %c0_0 = arith.constant 0 : index
    %0 = vector.load %arg1[%c0, %c0_0] : memref<8x256xf32, #tpu.memory_space<vmem>>, vector<8x256xf32>
    %cst = arith.constant dense<0.000000e+00> : vector<8xf32>
    %1 = vector.multi_reduction <add>, %0, %cst [1] : vector<8x256xf32> to vector<8xf32>
    %2 = vector.shape_cast %1 : vector<8xf32> to vector<8x1xf32>
    %cst_1 = arith.constant 3.906250e-03 : f32
    %3 = vector.broadcast %cst_1 : f32 to vector<8x1xf32>
    %4 = arith.mulf %2, %3 : vector<8x1xf32>
    %5 = vector.broadcast %4 : vector<8x1xf32> to vector<8x256xf32>
    %6 = arith.subf %0, %5 : vector<8x256xf32>
    %7 = arith.mulf %6, %6 : vector<8x256xf32>
    %cst_2 = arith.constant dense<0.000000e+00> : vector<8xf32>
    %8 = vector.multi_reduction <add>, %7, %cst_2 [1] : vector<8x256xf32> to vector<8xf32>
    %9 = vector.shape_cast %8 : vector<8xf32> to vector<8x1xf32>
    %cst_3 = arith.constant 3.906250e-03 : f32
    %10 = vector.broadcast %cst_3 : f32 to vector<8x1xf32>
    %11 = arith.mulf %9, %10 : vector<8x1xf32>
    %c0_4 = arith.constant 0 : index
    %c0_5 = arith.constant 0 : index
    %12 = vector.load %arg2[%c0_4, %c0_5] : memref<8x1xf32, #tpu.memory_space<vmem>>, vector<8x1xf32>
    %c0_6 = arith.constant 0 : index
    %c0_7 = arith.constant 0 : index
    %13 = vector.load %arg3[%c0_6, %c0_7] : memref<8x1xf32, #tpu.memory_space<vmem>>, vector<8x1xf32>
    %cst_8 = arith.constant 9.99999974E-6 : f32
    %14 = vector.broadcast %cst_8 : f32 to vector<8x1xf32>
    %15 = arith.addf %11, %14 : vector<8x1xf32>
    %16 = math.rsqrt %15 : vector<8x1xf32>
    %17 = arith.mulf %12, %16 : vector<8x1xf32>
    %18 = arith.mulf %4, %17 : vector<8x1xf32>
    %19 = arith.subf %13, %18 : vector<8x1xf32>
    %20 = vector.broadcast %17 : vector<8x1xf32> to vector<8x256xf32>
    %21 = arith.mulf %0, %20 : vector<8x256xf32>
    %22 = vector.broadcast %19 : vector<8x1xf32> to vector<8x256xf32>
    %23 = arith.addf %21, %22 : vector<8x256xf32>
    %c0_9 = arith.constant 0 : index
    %c0_10 = arith.constant 0 : index
    %24 = vector.load %arg4[%c0_9, %c0_10] : memref<8x256xf32, #tpu.memory_space<vmem>>, vector<8x256xf32>
    tpu.vector_store %arg4[%c0_9, %c0_10], %23 {strides = array<i32>} : memref<8x256xf32, #tpu.memory_space<vmem>>, vector<8x256xf32>,
    return
  }
  func.func @transform_0(%arg0: i32) -> (i32, i32) {
    %c0_i32 = arith.constant 0 : i32
    %c0_i32_0 = arith.constant 0 : i32
    return %arg0, %c0_i32 : i32, i32
  }
  func.func @transform_1(%arg0: i32) -> (i32, i32) {
    %c0_i32 = arith.constant 0 : i32
    %c0_i32_0 = arith.constant 0 : i32
    return %arg0, %c0_i32 : i32, i32
  }
  func.func @transform_2(%arg0: i32) -> (i32, i32) {
    %c0_i32 = arith.constant 0 : i32
    %c0_i32_0 = arith.constant 0 : i32
    return %arg0, %c0_i32 : i32, i32
  }
  func.func @transform_3(%arg0: i32) -> (i32, i32) {
    %c0_i32 = arith.constant 0 : i32
    %c0_i32_0 = arith.constant 0 : i32
    return %arg0, %c0_i32 : i32, i32
  }
}

</mosaic_0001>

<bundles_post_ra>
// kernel: tpu_custom_call.1
= control target key start
LH: loop header
LB: loop body
LE: loop exit
PB: predicated region body
PF: predicated region fallthrough
CT: control target
= control target key end

     0   :  { %s131_s0 = inlined_call_operand.vmem [shape: f32[8,256], index: 0, kind: input, shape index: {}]   ;;  %s132_s1 = inlined_call_operand.vmem [shape: f32[8,1], index: 1, kind: input, shape index: {}]   ;;  %s133_s2 = inlined_call_operand.vmem [shape: f32[8,1], index: 2, kind: input, shape index: {}]   ;;  %s134_s3 = inlined_call_operand.hbm [shape: f32[8,256], index: 3, kind: output, shape index: {}]  }
   0x1   :  { %v15_v0 = vld [vmem:[%s131_s0] sm:$0xff]  ;;  %v16_v1 = vld [vmem:[%s131_s0 + $0x8] sm:$0xff] }
   0x2   :  { %8 = vsyncpa [#allocation3], 0  ;;  %v17_v2 = vadd.f32 %v16_v1, %v15_v0  ;;  %v94_v10 = vmov 0   ;;  %v29_v14 = vld [vmem:[%s132_s1] sm:$0xff]  ;;  %s95_s19 = smov [#allocation2]  }
   0x3   :  { %68 = vset.pattern.permute.xlu1 %v94_v10  ;;  %69 = vset.pattern.permute.xlu0 %v94_v10  ;;  %v30_v17 = vld [vmem:[%s133_s2] sm:$0xff]  ;;  %s58_s20 = sshll.u32 %s95_s19, 4  ;;  %s59_s20 = int_to_ptr.vmem [resolvable:$true] %s58_s20 }
   0x4   :  { %18 = vadd.xlane.f32.xlu0 %v17_v2  ;;  %s72_s1 = scalar_lea.vmem %s59_s20, 256  ;;  %p77_p1 = scmp.lt.s32.totalorder %s59_s20, %s59_s20 }
   0x5   :  { %p73_p0 = scmp.ne.s32.totalorder %s59_s20, %s72_s1  ;;  %p78_p2 = scmp.lt.s32.totalorder %s72_s1, %s72_s1 }
   0x7   :  { %p79_p3 = por %p78_p2, %p77_p1 }
   0x9   :  { %p80_p4 = pnand %p79_p3, %p73_p0 }
  0x8d   :  { %v19_v3 = vpop.xlane.xlu0 %18 }
  0x8e   :  { %v20_v4 = vmul.f32 0.00390625, %v19_v3 }
  0x90   :  { %v21_v5 = vsub.f32 %v15_v0, %v20_v4  ;;  %v22_v6 = vsub.f32 %v16_v1, %v20_v4 }
  0x92   :  { %v23_v7 = vmul.f32 %v21_v5, %v21_v5  ;;  %v24_v8 = vmul.f32 %v22_v6, %v22_v6 }
  0x94   :  { %v25_v9 = vadd.f32 %v24_v8, %v23_v7 }
  0x96   :  { %26 = vadd.xlane.f32.xlu0 %v25_v9 }
 0x11f   :  { %v27_v11 = vpop.xlane.xlu0 %26 }
 0x120   :  { %v28_v12 = vmul.f32 0.00390625, %v27_v11 }
 0x122   :  { %v31_v13 = vadd.f32 1e-05, %v28_v12 }
 0x124   :  { %70 = vrsqrt.f32 %v31_v13 }
 0x131   :  { %v71_v15 = vpop.eup %70 }
 0x132   :  { %v33_v16 = vmul.f32 %v71_v15, %v29_v14 }
 0x134   :  { %38 = vperm.xlu1 %68, %v33_v16   ;;  %v34_v18 = vmul.f32 %v33_v16, %v20_v4 }
 0x136   :  { %v35_v19 = vsub.f32 %v30_v17, %v34_v18 }
 0x138   :  { %45 = vperm.xlu1 %68, %v35_v19  }
 0x1af   :  { %v39_v20 = vpop.permute.xlu1 %38 }
 0x1b0   :  { %v41_v21 = vmul.f32 %v39_v20, %v15_v0  ;;  %v42_v22 = vmul.f32 %v39_v20, %v16_v1 }
 0x1b3   :  { %v46_v23 = vpop.permute.xlu1 %45 }
 0x1b4   :  { %v48_v24 = vadd.f32 %v46_v23, %v41_v21  ;;  %v49_v25 = vadd.f32 %v46_v23, %v42_v22 }
 0x1b6   :  { %50 = vst [vmem:[#allocation2] sm:$0xff] %v48_v24  ;;  %51 = vst [vmem:[#allocation2 + $0x8] sm:$0xff] %v49_v25 }
 0x1b7   :  { %83 = shalt.err (!%p80_p4)
}
 0x1b8   :  { %61 = dma.vmem_to_hbm [thread:$0]  %s59_s20, 256, %s134_s3, [#allocation3]  }
 0x1b9   :  { %92 = dma.done.wait [#allocation3], 256  }
 0x1ba   :  { %93 = vsyncadd [#allocation3], 4294967040 }
 0x1bb   :  { %65 = vsyncpa [#allocation3], 1 }

</bundles_post_ra>
